<compile_context>
chip_gen: v7x
topology: tpu7x:2x2x1
jax: 0.10.0
libtpu: 0.0.40
codegen_flags: <defaults>
</compile_context>

<pallas_src>
import jax
import jax.numpy as jnp
from jax.experimental import pallas as pl
from jax.experimental.pallas import tpu as pltpu


def _round_up(n, m):
    return -(-n // m) * m


def toy_mp_kernel(xT_ref, w1_ref, b1_ref, w2_ref, b2_ref, oT_ref):
    # xT_ref : (10, TB)   w1_ref : (10, 10)   b1_ref : (10, 1)
    # w2_ref : (5, 10)    b2_ref : (5, 1)     oT_ref : (5, TB)
    xT = xT_ref[...].astype(jnp.float32)

    # net1: W1 @ xT + b1 -> ReLU           (batch lives in the lane dimension)
    h = jnp.dot(w1_ref[...], xT, preferred_element_type=jnp.float32)   # (10, TB)
    h = jnp.maximum(h + b1_ref[...], 0.0)

    # net2: W2 @ h + b2
    y = jnp.dot(w2_ref[...], h, preferred_element_type=jnp.float32)    # (5, TB)
    oT_ref[...] = (y + b2_ref[...]).astype(oT_ref.dtype)


def prepare_params(w1, b1, w2, b2, dtype=jnp.float32):
    """Call-once param prep (hoisted off the per-call path). Weights keep the
    PyTorch (out, in) layout; biases become column vectors for lane-broadcast."""
    return (
        w1.astype(dtype),                  # (10, 10)
        b1.reshape(-1, 1).astype(dtype),   # (10, 1)
        w2.astype(dtype),                  # (5, 10)
        b2.reshape(-1, 1).astype(dtype),   # (5, 1)
    )


def toy_mp_forward_t(xT, params, *, tb_max=65536, out_dtype=None):
    """Fast path: feature-major I/O.

    xT: (10, B) in its native dtype; returns yT: (5, B).
    No wrapper-side transpose/pad/slice/upcast -> no extra HBM round-trips
    around a bandwidth-bound kernel.
    """
    w1, b1c, w2, b2c = params
    in_f, B = xT.shape
    out_f = w2.shape[0]
    if out_dtype is None:
        out_dtype = xT.dtype

    # Lane tile: multiple of 128; big enough (up to tb_max) to amortize the
    # ~0.35 us per-grid-step overhead; chosen so large B gives >= 2 grid steps
    # (both v7x TensorCores run); 192*tb bytes of double-buffered VMEM stays
    # under the 16 MiB v5e default scoped VMEM at tb_max=65536.
    tb = max(128, min(int(tb_max), _round_up(pl.cdiv(B, 2), 128)))
    grid = (pl.cdiv(B, tb),)   # partial last block handled by Pallas clipping

    const = lambda shape: pl.BlockSpec(shape, lambda i: (0, 0))

    return pl.pallas_call(
        toy_mp_kernel,
        out_shape=jax.ShapeDtypeStruct((out_f, B), out_dtype),
        grid=grid,
        in_specs=[
            pl.BlockSpec((in_f, tb), lambda i: (0, i)),   # xT tile (lane-dense)
            const(w1.shape),                              # (10, 10) resident
            const(b1c.shape),                             # (10, 1)  resident
            const(w2.shape),                              # (5, 10)  resident
            const(b2c.shape),                             # (5, 1)   resident
        ],
        out_specs=pl.BlockSpec((out_f, tb), lambda i: (0, i)),  # lane-dense
        compiler_params=pltpu.CompilerParams(
            dimension_semantics=("parallel",)),           # megacore-shard (v7x)
    )(xT, w1, b1c, w2, b2c)


def toy_mp_forward(x, params, **kw):
    """PyTorch-layout compat wrapper: x (B, 10) -> (B, 5).

    The boundary transposes are pure layout plumbing and cost extra HBM traffic;
    prefer toy_mp_forward_t when upstream can hand over feature-major data."""
    return toy_mp_forward_t(x.T, params, **kw).T


def init_params(key):
    """PyTorch nn.Linear default init: U(-1/sqrt(fan_in), 1/sqrt(fan_in))."""
    k1, k2, k3, k4 = jax.random.split(key, 4)
    bound = 1.0 / jnp.sqrt(10.0)
    w1 = jax.random.uniform(k1, (10, 10), jnp.float32, -bound, bound)  # (out, in)
    b1 = jax.random.uniform(k2, (10,), jnp.float32, -bound, bound)
    w2 = jax.random.uniform(k3, (5, 10), jnp.float32, -bound, bound)   # (out, in)
    b2 = jax.random.uniform(k4, (5,), jnp.float32, -bound, bound)
    return w1, b1, w2, b2


if __name__ == "__main__":
    key = jax.random.PRNGKey(0)
    kx, kp = jax.random.split(key)

    batch = 8
    x = jax.random.normal(kx, (batch, 10), jnp.float32)
    w1, b1, w2, b2 = init_params(kp)
    params = prepare_params(w1, b1, w2, b2)   # hoisted out of the call path

    # Fast path: feature-major in/out (this is what production callers should use).
    yT = toy_mp_forward_t(x.T, params)
    yT = jax.block_until_ready(yT)
    out = yT.T                                # (B, 5), only for the check below

    # PyTorch-layout compat wrapper must agree.
    out_compat = jax.block_until_ready(toy_mp_forward(x, params))

    # Pure-JAX reference (same math as the PyTorch module).
    ref = jnp.maximum(x @ w1.T + b1, 0.0) @ w2.T + b2
    assert out.shape == (batch, 5)
    assert jnp.allclose(out, ref, atol=1e-5, rtol=1e-5)
    assert jnp.allclose(out_compat, ref, atol=1e-5, rtol=1e-5)

    # TODO(synk): the dev0/dev1 model-parallel placement (x.to(dev0)/.to(dev1))
    # and the DDP wrapper have no single-kernel equivalent; both layers are
    # fused on one TensorCore.
    print("KERNEL_OK")
</pallas_src>

<mosaic_0001>
module attributes {stable_mosaic.version = 11 : i64} {
  func.func @toy_mp_kernel(%arg0: i32, %arg1: memref<10x128xf32, #tpu.memory_space<vmem>>, %arg2: memref<10x10xf32, #tpu.memory_space<vmem>>, %arg3: memref<10x1xf32, #tpu.memory_space<vmem>>, %arg4: memref<5x10xf32, #tpu.memory_space<vmem>>, %arg5: memref<5x1xf32, #tpu.memory_space<vmem>>, %arg6: memref<5x128xf32, #tpu.memory_space<vmem>>) attributes {dimension_semantics = [#tpu.dimension_semantics<parallel>], iteration_bounds = array<i64: 1>, scalar_prefetch = 0 : i64, scratch_operands = 0 : i64, tpu.core_type = #tpu.core_type<tc>, window_params = [{transform_indices = @transform_0, window_bounds = array<i64: 10, 128>}, {pipeline_mode = #tpu.pipeline_mode<synchronous>, transform_indices = @transform_1, window_bounds = array<i64: 10, 10>}, {pipeline_mode = #tpu.pipeline_mode<synchronous>, transform_indices = @transform_2, window_bounds = array<i64: 10, 1>}, {pipeline_mode = #tpu.pipeline_mode<synchronous>, transform_indices = @transform_3, window_bounds = array<i64: 5, 10>}, {pipeline_mode = #tpu.pipeline_mode<synchronous>, transform_indices = @transform_4, window_bounds = array<i64: 5, 1>}, {transform_indices = @transform_5, window_bounds = array<i64: 5, 128>}]} {
    %c0 = arith.constant 0 : index
    %c0_0 = arith.constant 0 : index
    %0 = vector.load %arg1[%c0, %c0_0] : memref<10x128xf32, #tpu.memory_space<vmem>>, vector<10x128xf32>
    %c0_1 = arith.constant 0 : index
    %c0_2 = arith.constant 0 : index
    %1 = vector.load %arg2[%c0_1, %c0_2] : memref<10x10xf32, #tpu.memory_space<vmem>>, vector<10x10xf32>
    %cst = arith.constant dense<0.000000e+00> : vector<10x128xf32>
    %2 = tpu.matmul %1, %0, %cst {dimension_numbers = #tpu.dot_dimension_numbers<[1], [0], [0], [1], [0, 0, 1, 1], [], []>} : vector<10x10xf32>, vector<10x128xf32>, vector<10x128xf32> -> vector<10x128xf32>
    %c0_3 = arith.constant 0 : index
    %c0_4 = arith.constant 0 : index
    %3 = vector.load %arg3[%c0_3, %c0_4] : memref<10x1xf32, #tpu.memory_space<vmem>>, vector<10x1xf32>
    %4 = vector.broadcast %3 : vector<10x1xf32> to vector<10x128xf32>
    %5 = arith.addf %2, %4 : vector<10x128xf32>
    %cst_5 = arith.constant 0.000000e+00 : f32
    %6 = vector.broadcast %cst_5 : f32 to vector<10x128xf32>
    %7 = arith.maximumf %5, %6 : vector<10x128xf32>
    %c0_6 = arith.constant 0 : index
    %c0_7 = arith.constant 0 : index
    %8 = vector.load %arg4[%c0_6, %c0_7] : memref<5x10xf32, #tpu.memory_space<vmem>>, vector<5x10xf32>
    %cst_8 = arith.constant dense<0.000000e+00> : vector<5x128xf32>
    %9 = tpu.matmul %8, %7, %cst_8 {dimension_numbers = #tpu.dot_dimension_numbers<[1], [0], [0], [1], [0, 0, 1, 1], [], []>} : vector<5x10xf32>, vector<10x128xf32>, vector<5x128xf32> -> vector<5x128xf32>
    %c0_9 = arith.constant 0 : index
    %c0_10 = arith.constant 0 : index
    %10 = vector.load %arg5[%c0_9, %c0_10] : memref<5x1xf32, #tpu.memory_space<vmem>>, vector<5x1xf32>
    %11 = vector.broadcast %10 : vector<5x1xf32> to vector<5x128xf32>
    %12 = arith.addf %9, %11 : vector<5x128xf32>
    %c0_11 = arith.constant 0 : index
    %c0_12 = arith.constant 0 : index
    %13 = vector.load %arg6[%c0_11, %c0_12] : memref<5x128xf32, #tpu.memory_space<vmem>>, vector<5x128xf32>
    tpu.vector_store %arg6[%c0_11, %c0_12], %12 {strides = array<i32>} : memref<5x128xf32, #tpu.memory_space<vmem>>, vector<5x128xf32>,
    return
  }
  func.func @transform_0(%arg0: i32) -> (i32, i32) {
    %c0_i32 = arith.constant 0 : i32
    %c0_i32_0 = arith.constant 0 : i32
    return %c0_i32, %arg0 : i32, i32
  }
  func.func @transform_1(%arg0: i32) -> (i32, i32) {
    %c0_i32 = arith.constant 0 : i32
    %c0_i32_0 = arith.constant 0 : i32
    %c0_i32_1 = arith.constant 0 : i32
    return %c0_i32, %c0_i32_0 : i32, i32
  }
  func.func @transform_2(%arg0: i32) -> (i32, i32) {
    %c0_i32 = arith.constant 0 : i32
    %c0_i32_0 = arith.constant 0 : i32
    %c0_i32_1 = arith.constant 0 : i32
    return %c0_i32, %c0_i32_0 : i32, i32
  }
  func.func @transform_3(%arg0: i32) -> (i32, i32) {
    %c0_i32 = arith.constant 0 : i32
    %c0_i32_0 = arith.constant 0 : i32
    %c0_i32_1 = arith.constant 0 : i32
    return %c0_i32, %c0_i32_0 : i32, i32
  }
  func.func @transform_4(%arg0: i32) -> (i32, i32) {
    %c0_i32 = arith.constant 0 : i32
    %c0_i32_0 = arith.constant 0 : i32
    %c0_i32_1 = arith.constant 0 : i32
    return %c0_i32, %c0_i32_0 : i32, i32
  }
  func.func @transform_5(%arg0: i32) -> (i32, i32) {
    %c0_i32 = arith.constant 0 : i32
    %c0_i32_0 = arith.constant 0 : i32
    return %c0_i32, %arg0 : i32, i32
  }
}

</mosaic_0001>

<bundles_post_ra>
// kernel: tpu_custom_call.1
= control target key start
LH: loop header
LB: loop body
LE: loop exit
PB: predicated region body
PF: predicated region fallthrough
CT: control target
= control target key end

     0   :  { %vm44_vm0 = vcmask 1041408   ;;  %vm291_vm1 = vmmov 1   ;;  %vm37_vm3 = vcmask 80896   ;;  %v292_v6 = vmov 0   ;;  %s376_s0 = inlined_call_operand.vmem [shape: f32[10,8], index: 0, kind: input, shape index: {}]   ;;  %s377_s1 = inlined_call_operand.vmem [shape: f32[10,10], index: 1, kind: input, shape index: {}]   ;;  %s378_s2 = inlined_call_operand.vmem [shape: f32[10,1], index: 2, kind: input, shape index: {}]   ;;  %s379_s3 = inlined_call_operand.vmem [shape: f32[5,10], index: 3, kind: input, shape index: {}]   ;;  %s380_s4 = inlined_call_operand.vmem [shape: f32[5,1], index: 4, kind: input, shape index: {}]   ;;  %s381_s5 = inlined_call_operand.hbm [shape: f32[5,8], index: 5, kind: output, shape index: {}]  }
   0x1   :  { %v21_v0 = vld [vmem:[%s376_s0] sm:$0xff]  ;;  %v22_v1 = vld [vmem:[%s376_s0 + $0x8] sm:$0x3]  ;;  %vm336_vm2 = vmpackc.low %vm44_vm0, %vm291_vm1  ;;  %265 = vset.pattern.permute.xlu0 %v292_v6 }
   0x2   :  { %v23_v2 = vld [vmem:[%s377_s1] sm:$0xff]  ;;  %v249_v3 = vpack.c.bf16 %v22_v1, %v21_v0 }
   0x3   :  { %v25_v5 = vld [vmem:[%s378_s2] sm:$0xff]  ;;  %239 = vmatprep.mubr.msk.f32.mxu0 %vm37_vm3, %v23_v2 }
   0x4   :  { %10 = vsyncpa [#allocation3], 0  ;;  %251 = vmatprep.subr.msk.bf16.mxu0 %vm336_vm2, %v249_v3  ;;  %29 = vperm.xlu0 %265, %v25_v5   ;;  %v24_v7 = vld [vmem:[%s377_s1 + $0x8] sm:$0x3]  ;;  %v293_v9 = vmov 0.0|0.0   ;;  %vm294_vm4 = vmmov 0  }
   0x5   :  { %254 = vmatpush3.bf16.msk.msra.mxu0 %vm336_vm2, %v249_v3  ;;  %v26_v8 = vld [vmem:[%s378_s2 + $0x8] sm:$0x3]  ;;  %266 = vset.pattern.permute.xlu1 %v292_v6  ;;  %v295_v10 = vmov 0.0   ;;  %v126_v11 = vld [vmem:[%s380_s4] sm:$0x1f]  ;;  %s296_s4 = smov [#allocation2]  }
   0x6   :  { %255 = vmatprep.subr.bf16.mxu1 %v293_v9  ;;  %246 = vmatprep.mubr.msk.f32.mxu1 %vm294_vm4, %v295_v10  ;;  %v125_v21 = vld [vmem:[%s379_s3] sm:$0x1f]  ;;  %s215_s6 = sshll.u32 %s296_s4, 4  ;;  %s216_s6 = int_to_ptr.vmem [resolvable:$true] %s215_s6 }
   0x7   :  { %129 = vperm.xlu1 %266, %v126_v11   ;;  %s267_s7 = scalar_lea.vmem %s216_s6, 128  ;;  %p272_p1 = scmp.lt.s32.totalorder %s216_s6, %s216_s6 }
   0x8   :  { %240 = vmatmul.mubr.msk.f32.vlgmr.msra.gmra.mrb[0].mxu0 %vm37_vm3, %v24_v7  ;;  %34 = vperm.xlu0 %265, %v26_v8   ;;  %p268_p0 = scmp.ne.s32.totalorder %s216_s6, %s267_s7  ;;  %p273_p2 = scmp.lt.s32.totalorder %s267_s7, %s267_s7 }
   0xa   :  { %p274_p3 = por %p273_p2, %p272_p1 }
   0xc   :  { %p275_p4 = pnand %p274_p3, %p268_p0 }
  0x83   :  { %v30_v12 = vpop.permute.xlu0 %29 }
  0x86   :  { %v130_v22 = vpop.permute.xlu1 %129 }
  0x87   :  { %v35_v13 = vpop.permute.xlu0 %34 }
  0xdb   :  { %v241_v14 = vpop.f32.mrb[0].mxu0 }
  0xdc   :  { %v120_v15 = vadd.f32 %v241_v14, %v35_v13  ;;  %v114_v16 = vpop.f32.mrb[1].mxu0 }
  0xdd   :  { %v115_v17 = vadd.f32 %v114_v16, %v30_v12 }
  0xde   :  { %v124_v18 = vmax.f32 %v120_v15, 0.0 }
  0xdf   :  { %v123_v19 = vmax.f32 %v115_v17, 0.0 }
  0xe1   :  { %v256_v20 = vpack.c.bf16 %v124_v18, %v123_v19 }
  0xe3   :  { %258 = vmatpush3.bf16.msk.msra.mxu1 %vm336_vm2, %v256_v20 }
  0xe6   :  { %247 = vmatmul.mubr.msk.f32.vlgmr.msra.gmra.mrb[0].mxu1 %vm37_vm3, %v125_v21 }
 0x1b9   :  { %v204_v23 = vpop.f32.mrb[0].mxu1 }
 0x1ba   :  { %v205_v24 = vadd.f32 %v204_v23, %v130_v22  ;;  %v248_v25 = vpop.f32.mrb[1].mxu1 }
 0x1bc   :  { %208 = vst [vmem:[#allocation2] sm:$0x1f] %v205_v24 }
 0x1bd   :  { %278 = shalt.err (!%p275_p4)
}
 0x1be   :  { %s279_s3 = scalar_lea.hbm %s381_s5, 128 }
 0x1bf   :  { %p280_p5 = scmp.ne.s32.totalorder %s381_s5, %s279_s3  ;;  %p283_p6 = scmp.lt.u32.totalorder %s279_s3, %s381_s5 }
 0x1c1   :  { %p285_p7 = pnand %p283_p6, %p280_p5 }
 0x1c3   :  { %288 = shalt.err (!%p285_p7)
}
 0x1c4   :  { %218 = dma.vmem_to_hbm [thread:$0]  %s216_s6, 128, %s381_s5, [#allocation3]  }
 0x1c5   :  { %289 = dma.done.wait [#allocation3], 128  }
 0x1c6   :  { %290 = vsyncadd [#allocation3], 4294967168 }
 0x1c7   :  { %222 = vsyncpa [#allocation3], 1 }

</bundles_post_ra>
